<compile_context>
chip_gen: v6e
topology: v6e:2x2x1
jax: 0.10.0
libtpu: 0.0.40
codegen_flags: <defaults>
</compile_context>

<pallas_src>
import functools

import jax
import jax.numpy as jnp
from jax import lax
from jax.experimental import pallas as pl
from jax.experimental.pallas import tpu as pltpu


_LAYER_SIZES = [(4, 32), (32, 128), (128, 64), (64, 15)]
_SUB = 128  # rows per sub-block / MXU push; keeps live vregs well under 64


def _round_up(n, m):
    return ((n + m - 1) // m) * m


def _cdiv(a, b):
    return (a + b - 1) // b


def _mlp_kernel(x_ref,
                w1_ref, b1_ref,
                w2_ref, b2_ref,
                w3_ref, b3_ref,
                w4_ref, b4_ref,
                o_ref, *, sub_rows, n_sub):
    """One (TB, 4) -> (TB, 15) batch tile of the MLP, SUB rows at a time.

    Weights arrive pre-cast to bf16 (MXU operands); biases, ReLU and the
    output store stay f32.
    """
    # Hoisted reads: done once per tile instead of once per unrolled
    # sub-block (JAX does not CSE these).
    w1 = w1_ref[...]
    w2 = w2_ref[...]
    w3 = w3_ref[...]
    w4 = w4_ref[...]
    b1 = b1_ref[...]
    b2 = b2_ref[...]
    b3 = b3_ref[...]
    b4 = b4_ref[...]

    def body(s, carry):
        row = pl.multiple_of(s * sub_rows, sub_rows)

        # fc1 on the MXU (bf16 operands, f32 accumulate). Avoids per-vreg
        # lane broadcasts that would compete with vmatmul for the
        # vector-extended issue slots.
        xs = x_ref[pl.ds(row, sub_rows), :].astype(jnp.bfloat16)      # (SUB, 4)
        h = jnp.dot(xs, w1, preferred_element_type=jnp.float32)
        h = jnp.maximum(h + b1, 0.0)                                  # (SUB, 32)  f32

        # fc2 + relu
        h = jnp.dot(h.astype(jnp.bfloat16), w2,
                    preferred_element_type=jnp.float32)
        h = jnp.maximum(h + b2, 0.0)                                  # (SUB, 128) f32

        # fc3 + relu
        h = jnp.dot(h.astype(jnp.bfloat16), w3,
                    preferred_element_type=jnp.float32)
        h = jnp.maximum(h + b3, 0.0)                                  # (SUB, 64)  f32

        # fc4 (no activation)
        h = jnp.dot(h.astype(jnp.bfloat16), w4,
                    preferred_element_type=jnp.float32)
        o_ref[pl.ds(row, sub_rows), :] = (h + b4).astype(o_ref.dtype)  # (SUB, 15)
        return carry

    lax.fori_loop(0, n_sub, body, 0, unroll=True)


def _choose_tiling(B, tb_max):
    """Pick (tile_rows, sub_rows) for the batch grid."""
    if B <= _SUB:
        tb = _round_up(max(B, 8), 8)
        return tb, tb
    n_tiles = _cdiv(B, tb_max)
    # Prefer an even tile count so the "parallel" batch axis splits evenly
    # over v7x's two TensorCores (an odd split leaves one core idle).
    if n_tiles < 2:
        n_tiles = 2
    if n_tiles % 2:
        n_tiles += 1
    tb = _round_up(_cdiv(B, n_tiles), _SUB)
    return tb, _SUB


def deep_neural_nets_forward(x, params, *, tb_max=2048):
    """x: [B, 4] float32. params: dict of (W[in,out] f32, b[1,out] f32).

    y = relu(relu(relu(x@W1+b1)@W2+b2)@W3+b3)@W4+b4  (torch stores W as
    [out,in]; here [in,out]).  MXU operands are bf16, accumulation is f32.
    """
    w1, b1 = params["w1"], params["b1"]
    w2, b2 = params["w2"], params["b2"]
    w3, b3 = params["w3"], params["b3"]
    w4, b4 = params["w4"], params["b4"]

    B, F = x.shape
    n_out = w4.shape[1]

    tb, sub = _choose_tiling(B, tb_max)
    b_pad = _round_up(B, tb)
    if b_pad != B:
        x = jnp.pad(x, ((0, b_pad - B), (0, 0)))

    # bf16 MXU operands (3-6x fewer MXU passes than f32 matmuls); all
    # elementwise math stays f32 inside the kernel.
    w_bf = [w.astype(jnp.bfloat16) for w in (w1, w2, w3, w4)]

    kernel = functools.partial(_mlp_kernel, sub_rows=sub, n_sub=tb // sub)

    def _resident(arr):
        # Full-array block + constant index_map -> loaded once and kept
        # VMEM-resident across all batch-grid iterations.
        return pl.BlockSpec(arr.shape, lambda i: (0, 0))

    flops = 2 * b_pad * sum(fi * fo for fi, fo in _LAYER_SIZES)
    bytes_accessed = (b_pad * (F + n_out) * 4
                      + sum(int(w.size) * 2 for w in w_bf)
                      + sum(int(b.size) * 4 for b in (b1, b2, b3, b4)))

    out = pl.pallas_call(
        kernel,
        out_shape=jax.ShapeDtypeStruct((b_pad, n_out), x.dtype),
        grid=(b_pad // tb,),
        in_specs=[
            pl.BlockSpec((tb, F), lambda i: (i, 0)),   # x: batch-tiled, pipelined
            _resident(w_bf[0]), _resident(b1),
            _resident(w_bf[1]), _resident(b2),
            _resident(w_bf[2]), _resident(b3),
            _resident(w_bf[3]), _resident(b4),
        ],
        out_specs=pl.BlockSpec((tb, n_out), lambda i: (i, 0)),
        compiler_params=pltpu.CompilerParams(
            dimension_semantics=("parallel",),         # shard batch across TCs
            vmem_limit_bytes=32 << 20,                 # padded-tile footprint is ~4-5 MiB
        ),
        cost_estimate=pl.CostEstimate(
            flops=flops, transcendentals=0, bytes_accessed=bytes_accessed),
    )(x, w_bf[0], b1, w_bf[1], b2, w_bf[2], b3, w_bf[3], b4)

    return out[:B] if b_pad != B else out


def init_params(key):
    """Deterministic init mimicking torch.nn.Linear (U[-1/sqrt(in), 1/sqrt(in)])."""
    params = {}
    keys = jax.random.split(key, 2 * len(_LAYER_SIZES))
    for i, (fin, fout) in enumerate(_LAYER_SIZES):
        bound = 1.0 / (fin ** 0.5)
        params[f"w{i + 1}"] = jax.random.uniform(
            keys[2 * i], (fin, fout), jnp.float32, -bound, bound)
        params[f"b{i + 1}"] = jax.random.uniform(
            keys[2 * i + 1], (1, fout), jnp.float32, -bound, bound)
    return params


def reference_forward_f32(x, params):
    dot = functools.partial(jnp.dot, precision=lax.Precision.HIGHEST)
    h = x
    for i in range(1, 4):
        h = jnp.maximum(dot(h, params[f"w{i}"]) + params[f"b{i}"], 0.0)
    return dot(h, params["w4"]) + params["b4"]


def reference_forward_bf16(x, params):
    """Mirrors the kernel numerics: bf16 MXU operands, f32 accumulate/elementwise."""
    def bdot(a, w):
        return jnp.dot(a.astype(jnp.bfloat16), w.astype(jnp.bfloat16),
                       preferred_element_type=jnp.float32)
    h = x
    for i in range(1, 4):
        h = jnp.maximum(bdot(h, params[f"w{i}"]) + params[f"b{i}"], 0.0)
    return bdot(h, params["w4"]) + params["b4"]


if __name__ == "__main__":
    key = jax.random.PRNGKey(0)
    pkey, xkey1, xkey2 = jax.random.split(key, 3)
    params = init_params(pkey)

    # Small, single-tile inference batch.
    x_small = jax.random.normal(xkey1, (8, 4), jnp.float32)
    out_small = jax.block_until_ready(deep_neural_nets_forward(x_small, params))
    assert out_small.shape == (8, 15), out_small.shape
    assert jnp.allclose(out_small, reference_forward_bf16(x_small, params),
                        atol=2e-3, rtol=2e-3), "mismatch vs bf16 reference (small)"
    assert jnp.allclose(out_small, reference_forward_f32(x_small, params),
                        atol=1e-1, rtol=1e-1), "mismatch vs f32 reference (small)"

    # Ragged multi-tile batch: exercises padding, the 2-tile parallel grid,
    # and the pipelined x/out DMA path.
    x_big = jax.random.normal(xkey2, (300, 4), jnp.float32)
    out_big = jax.block_until_ready(deep_neural_nets_forward(x_big, params))
    assert out_big.shape == (300, 15), out_big.shape
    assert jnp.allclose(out_big, reference_forward_bf16(x_big, params),
                        atol=2e-3, rtol=2e-3), "mismatch vs bf16 reference (big)"
    assert jnp.allclose(out_big, reference_forward_f32(x_big, params),
                        atol=1e-1, rtol=1e-1), "mismatch vs f32 reference (big)"

    print("KERNEL_OK")
</pallas_src>

<mosaic_0001>
module attributes {stable_mosaic.version = 11 : i64} {
  func.func @_mlp_kernel(%arg0: i32, %arg1: memref<8x4xf32, #tpu.memory_space<vmem>>, %arg2: memref<4x32xbf16, #tpu.memory_space<vmem>>, %arg3: memref<1x32xf32, #tpu.memory_space<vmem>>, %arg4: memref<32x128xbf16, #tpu.memory_space<vmem>>, %arg5: memref<1x128xf32, #tpu.memory_space<vmem>>, %arg6: memref<128x64xbf16, #tpu.memory_space<vmem>>, %arg7: memref<1x64xf32, #tpu.memory_space<vmem>>, %arg8: memref<64x15xbf16, #tpu.memory_space<vmem>>, %arg9: memref<1x15xf32, #tpu.memory_space<vmem>>, %arg10: memref<8x15xf32, #tpu.memory_space<vmem>>) attributes {dimension_semantics = [#tpu.dimension_semantics<parallel>], iteration_bounds = array<i64: 1>, scalar_prefetch = 0 : i64, scratch_operands = 0 : i64, tpu.core_type = #tpu.core_type<tc>, window_params = [{transform_indices = @transform_0, window_bounds = array<i64: 8, 4>}, {pipeline_mode = #tpu.pipeline_mode<synchronous>, transform_indices = @transform_1, window_bounds = array<i64: 4, 32>}, {pipeline_mode = #tpu.pipeline_mode<synchronous>, transform_indices = @transform_2, window_bounds = array<i64: 1, 32>}, {pipeline_mode = #tpu.pipeline_mode<synchronous>, transform_indices = @transform_3, window_bounds = array<i64: 32, 128>}, {pipeline_mode = #tpu.pipeline_mode<synchronous>, transform_indices = @transform_4, window_bounds = array<i64: 1, 128>}, {pipeline_mode = #tpu.pipeline_mode<synchronous>, transform_indices = @transform_5, window_bounds = array<i64: 128, 64>}, {pipeline_mode = #tpu.pipeline_mode<synchronous>, transform_indices = @transform_6, window_bounds = array<i64: 1, 64>}, {pipeline_mode = #tpu.pipeline_mode<synchronous>, transform_indices = @transform_7, window_bounds = array<i64: 64, 15>}, {pipeline_mode = #tpu.pipeline_mode<synchronous>, transform_indices = @transform_8, window_bounds = array<i64: 1, 15>}, {transform_indices = @transform_9, window_bounds = array<i64: 8, 15>}]} {
    %c0 = arith.constant 0 : index
    %c0_0 = arith.constant 0 : index
    %0 = vector.load %arg2[%c0, %c0_0] : memref<4x32xbf16, #tpu.memory_space<vmem>>, vector<4x32xbf16>
    %c0_1 = arith.constant 0 : index
    %c0_2 = arith.constant 0 : index
    %1 = vector.load %arg4[%c0_1, %c0_2] : memref<32x128xbf16, #tpu.memory_space<vmem>>, vector<32x128xbf16>
    %c0_3 = arith.constant 0 : index
    %c0_4 = arith.constant 0 : index
    %2 = vector.load %arg6[%c0_3, %c0_4] : memref<128x64xbf16, #tpu.memory_space<vmem>>, vector<128x64xbf16>
    %c0_5 = arith.constant 0 : index
    %c0_6 = arith.constant 0 : index
    %3 = vector.load %arg8[%c0_5, %c0_6] : memref<64x15xbf16, #tpu.memory_space<vmem>>, vector<64x15xbf16>
    %c0_7 = arith.constant 0 : index
    %c0_8 = arith.constant 0 : index
    %4 = vector.load %arg3[%c0_7, %c0_8] : memref<1x32xf32, #tpu.memory_space<vmem>>, vector<1x32xf32>
    %c0_9 = arith.constant 0 : index
    %c0_10 = arith.constant 0 : index
    %5 = vector.load %arg5[%c0_9, %c0_10] : memref<1x128xf32, #tpu.memory_space<vmem>>, vector<1x128xf32>
    %c0_11 = arith.constant 0 : index
    %c0_12 = arith.constant 0 : index
    %6 = vector.load %arg7[%c0_11, %c0_12] : memref<1x64xf32, #tpu.memory_space<vmem>>, vector<1x64xf32>
    %c0_13 = arith.constant 0 : index
    %c0_14 = arith.constant 0 : index
    %7 = vector.load %arg9[%c0_13, %c0_14] : memref<1x15xf32, #tpu.memory_space<vmem>>, vector<1x15xf32>
    %c0_i32 = arith.constant 0 : i32
    %c8_i32 = arith.constant 8 : i32
    %8 = arith.muli %c0_i32, %c8_i32 : i32
    %9 = tpu.assume_multiple %8, 8 : i32
    %10 = arith.index_cast %9 : i32 to index
    %c0_15 = arith.constant 0 : index
    %11 = vector.load %arg1[%10, %c0_15] : memref<8x4xf32, #tpu.memory_space<vmem>>, vector<8x4xf32>
    %12 = arith.truncf %11 : vector<8x4xf32> to vector<8x4xbf16>
    %cst = arith.constant dense<0.000000e+00> : vector<8x32xf32>
    %13 = tpu.matmul %12, %0, %cst {dimension_numbers = #tpu.dot_dimension_numbers<[1], [0], [0], [1], [0, 0, 1, 1], [], []>} : vector<8x4xbf16>, vector<4x32xbf16>, vector<8x32xf32> -> vector<8x32xf32>
    %14 = vector.broadcast %4 : vector<1x32xf32> to vector<8x32xf32>
    %15 = arith.addf %13, %14 : vector<8x32xf32>
    %cst_16 = arith.constant 0.000000e+00 : f32
    %16 = vector.broadcast %cst_16 : f32 to vector<8x32xf32>
    %17 = arith.maximumf %15, %16 : vector<8x32xf32>
    %18 = arith.truncf %17 : vector<8x32xf32> to vector<8x32xbf16>
    %cst_17 = arith.constant dense<0.000000e+00> : vector<8x128xf32>
    %19 = tpu.matmul %18, %1, %cst_17 {dimension_numbers = #tpu.dot_dimension_numbers<[1], [0], [0], [1], [0, 0, 1, 1], [], []>} : vector<8x32xbf16>, vector<32x128xbf16>, vector<8x128xf32> -> vector<8x128xf32>
    %20 = vector.broadcast %5 : vector<1x128xf32> to vector<8x128xf32>
    %21 = arith.addf %19, %20 : vector<8x128xf32>
    %cst_18 = arith.constant 0.000000e+00 : f32
    %22 = vector.broadcast %cst_18 : f32 to vector<8x128xf32>
    %23 = arith.maximumf %21, %22 : vector<8x128xf32>
    %24 = arith.truncf %23 : vector<8x128xf32> to vector<8x128xbf16>
    %cst_19 = arith.constant dense<0.000000e+00> : vector<8x64xf32>
    %25 = tpu.matmul %24, %2, %cst_19 {dimension_numbers = #tpu.dot_dimension_numbers<[1], [0], [0], [1], [0, 0, 1, 1], [], []>} : vector<8x128xbf16>, vector<128x64xbf16>, vector<8x64xf32> -> vector<8x64xf32>
    %26 = vector.broadcast %6 : vector<1x64xf32> to vector<8x64xf32>
    %27 = arith.addf %25, %26 : vector<8x64xf32>
    %cst_20 = arith.constant 0.000000e+00 : f32
    %28 = vector.broadcast %cst_20 : f32 to vector<8x64xf32>
    %29 = arith.maximumf %27, %28 : vector<8x64xf32>
    %30 = arith.truncf %29 : vector<8x64xf32> to vector<8x64xbf16>
    %cst_21 = arith.constant dense<0.000000e+00> : vector<8x15xf32>
    %31 = tpu.matmul %30, %3, %cst_21 {dimension_numbers = #tpu.dot_dimension_numbers<[1], [0], [0], [1], [0, 0, 1, 1], [], []>} : vector<8x64xbf16>, vector<64x15xbf16>, vector<8x15xf32> -> vector<8x15xf32>
    %32 = vector.broadcast %7 : vector<1x15xf32> to vector<8x15xf32>
    %33 = arith.addf %31, %32 : vector<8x15xf32>
    %34 = arith.index_cast %9 : i32 to index
    %c0_22 = arith.constant 0 : index
    %35 = vector.load %arg10[%34, %c0_22] : memref<8x15xf32, #tpu.memory_space<vmem>>, vector<8x15xf32>
    tpu.vector_store %arg10[%34, %c0_22], %33 {strides = array<i32>} : memref<8x15xf32, #tpu.memory_space<vmem>>, vector<8x15xf32>,
    %c1_i32 = arith.constant 1 : i32
    return
  }
  func.func @transform_0(%arg0: i32) -> (i32, i32) {
    %c0_i32 = arith.constant 0 : i32
    %c0_i32_0 = arith.constant 0 : i32
    return %arg0, %c0_i32 : i32, i32
  }
  func.func @transform_1(%arg0: i32) -> (i32, i32) {
    %c0_i32 = arith.constant 0 : i32
    %c0_i32_0 = arith.constant 0 : i32
    %c0_i32_1 = arith.constant 0 : i32
    return %c0_i32, %c0_i32_0 : i32, i32
  }
  func.func @transform_2(%arg0: i32) -> (i32, i32) {
    %c0_i32 = arith.constant 0 : i32
    %c0_i32_0 = arith.constant 0 : i32
    %c0_i32_1 = arith.constant 0 : i32
    return %c0_i32, %c0_i32_0 : i32, i32
  }
  func.func @transform_3(%arg0: i32) -> (i32, i32) {
    %c0_i32 = arith.constant 0 : i32
    %c0_i32_0 = arith.constant 0 : i32
    %c0_i32_1 = arith.constant 0 : i32
    return %c0_i32, %c0_i32_0 : i32, i32
  }
  func.func @transform_4(%arg0: i32) -> (i32, i32) {
    %c0_i32 = arith.constant 0 : i32
    %c0_i32_0 = arith.constant 0 : i32
    %c0_i32_1 = arith.constant 0 : i32
    return %c0_i32, %c0_i32_0 : i32, i32
  }
  func.func @transform_5(%arg0: i32) -> (i32, i32) {
    %c0_i32 = arith.constant 0 : i32
    %c0_i32_0 = arith.constant 0 : i32
    %c0_i32_1 = arith.constant 0 : i32
    return %c0_i32, %c0_i32_0 : i32, i32
  }
  func.func @transform_6(%arg0: i32) -> (i32, i32) {
    %c0_i32 = arith.constant 0 : i32
    %c0_i32_0 = arith.constant 0 : i32
    %c0_i32_1 = arith.constant 0 : i32
    return %c0_i32, %c0_i32_0 : i32, i32
  }
  func.func @transform_7(%arg0: i32) -> (i32, i32) {
    %c0_i32 = arith.constant 0 : i32
    %c0_i32_0 = arith.constant 0 : i32
    %c0_i32_1 = arith.constant 0 : i32
    return %c0_i32, %c0_i32_0 : i32, i32
  }
  func.func @transform_8(%arg0: i32) -> (i32, i32) {
    %c0_i32 = arith.constant 0 : i32
    %c0_i32_0 = arith.constant 0 : i32
    %c0_i32_1 = arith.constant 0 : i32
    return %c0_i32, %c0_i32_0 : i32, i32
  }
  func.func @transform_9(%arg0: i32) -> (i32, i32) {
    %c0_i32 = arith.constant 0 : i32
    %c0_i32_0 = arith.constant 0 : i32
    return %arg0, %c0_i32 : i32, i32
  }
}

</mosaic_0001>

<bundles_post_ra>
// kernel: tpu_custom_call.1
= control target key start
LH: loop header
LB: loop body
LE: loop exit
PB: predicated region body
PF: predicated region fallthrough
CT: control target
= control target key end

     0   :  { %vm79_vm0 = vcmask 1041408   ;;  %v500_v2 = vmov 0.0   ;;  %vm501_vm1 = vmmov 0   ;;  %vm75_vm2 = vcmask 31744   ;;  %s639_s0 = inlined_call_operand.vmem [shape: f32[8,4], index: 0, kind: input, shape index: {}]   ;;  %s640_s1 = inlined_call_operand.vmem [shape: bf16[4,32], index: 1, kind: input, shape index: {}]   ;;  %s641_s2 = inlined_call_operand.vmem [shape: f32[1,32], index: 2, kind: input, shape index: {}]   ;;  %s642_s3 = inlined_call_operand.vmem [shape: bf16[32,128], index: 3, kind: input, shape index: {}]   ;;  %s643_s4 = inlined_call_operand.vmem [shape: f32[1,128], index: 4, kind: input, shape index: {}]   ;;  %s644_s5 = inlined_call_operand.vmem [shape: bf16[128,64], index: 5, kind: input, shape index: {}]   ;;  %s645_s6 = inlined_call_operand.vmem [shape: f32[1,64], index: 6, kind: input, shape index: {}]   ;;  %s646_s7 = inlined_call_operand.vmem [shape: bf16[64,15], index: 7, kind: input, shape index: {}]   ;;  %s647_s8 = inlined_call_operand.vmem [shape: f32[1,15], index: 8, kind: input, shape index: {}]   ;;  %s648_s9 = inlined_call_operand.hbm [shape: f32[8,15], index: 9, kind: output, shape index: {}]  }
   0x1   :  { %v34_v0 = vld [vmem:[%s640_s1] sm:$0x3]  ;;  %415 = vmatprep.subr.bf16.mxu1 %v500_v2  ;;  %417 = vmatprep.mubr.msk.bf16.mxu1 %vm501_vm1, %v500_v2  ;;  %v464_v5 = vld [vmem:[%s642_s3 + $0x8] sm:$0xff]  }
   0x2   :  { %v67_v1 = vld [vmem:[%s639_s0] sm:$0xff]  ;;  %v81_v3 = vsel %vm79_vm0, %v34_v0, 0  ;;  %429 = vmatprep.subr.bf16.mxu0 %v500_v2  ;;  %445 = vmatprep.mubr.msk.bf16.mxu0 %vm501_vm1, %v500_v2 }
   0x3   :  { %v68_v4 = vpack.c.bf16 %v67_v1, %v67_v1  ;;  %416 = vmatpush3.bf16.msra.mxu1 %v81_v3 }
   0x4   :  { %421 = vmatprep.subr.bf16.mxu1 %v500_v2 }
   0x6   :  { %418 = vmatmul.mubr.msk.bf16.vlgmr.msra.gmra.mxu1 %vm75_vm2, %v68_v4 }
   0x7   :  { %422 = vmatpush3.bf16.msra.mxu1 %v464_v5  ;;  %425 = vmatprep.mubr.msk.bf16.mxu1 %vm501_vm1, %v500_v2 }
   0x8   :  { %423 = vmatprep.subr.bf16.mxu1 %v500_v2 }
   0x9   :  { %14 = vsyncpa [#allocation3], 0  ;;  %v465_v6 = vld [vmem:[%s642_s3] sm:$0xff]   ;;  %v466_v7 = vld [vmem:[%s644_s5 + $0x38] sm:$0xff]   ;;  %vm143_vm3 = vcmask 261120   ;;  %vm315_vm4 = vcmask 523264  }
   0xa   :  { %430 = vmatpush3.bf16.msra.mxu0 %v466_v7  ;;  %v467_v8 = vld [vmem:[%s644_s5 + $0x30] sm:$0xff]   ;;  %v468_v9 = vld [vmem:[%s644_s5 + $0x28] sm:$0xff]   ;;  %v469_v10 = vld [vmem:[%s644_s5 + $0x20] sm:$0xff]   ;;  %s502_s20 = smov [#allocation2]   ;;  %vm359_vm5 = vcmask 121856  }
   0xb   :  { %424 = vmatpush3.bf16.msra.mxu1 %v465_v6  ;;  %431 = vmatprep.subr.bf16.mxu0 %v500_v2  ;;  %v470_v11 = vld [vmem:[%s644_s5 + $0x18] sm:$0xff]   ;;  %v471_v12 = vld [vmem:[%s644_s5 + $0x10] sm:$0xff]   ;;  %v375_v13 = vld [vmem:[%s641_s2] ss:$0 sm:$0xff] }
   0xc   :  { %449 = vmatprep.subr.bf16.mxu1 %v500_v2  ;;  %v472_v21 = vld [vmem:[%s644_s5 + $0x8] sm:$0xff]   ;;  %v473_v22 = vld [vmem:[%s644_s5] sm:$0xff]   ;;  %v474_v23 = vld [vmem:[%s646_s7 + $0x18] sm:$0xff]  }
   0xd   :  { %v475_v24 = vld [vmem:[%s646_s7 + $0x10] sm:$0xff]   ;;  %v377_v25 = vld [vmem:[%s643_s4] ss:$0 sm:$0xff]  ;;  %v476_v33 = vld [vmem:[%s646_s7 + $0x8] sm:$0xff]  }
   0xe   :  { %432 = vmatpush3.bf16.msra.mxu0 %v467_v8  ;;  %v477_v34 = vld [vmem:[%s646_s7] sm:$0xff]   ;;  %s367_s7 = sshll.u32 %s502_s20, 4  ;;  %s368_s7 = int_to_ptr.vmem [resolvable:$true] %s367_s7 }
   0xf   :  { %433 = vmatprep.subr.bf16.mxu0 %v500_v2  ;;  %v381_v35 = vld [vmem:[%s645_s6] ss:$0 sm:$0xff]  ;;  %s478_s6 = scalar_lea.vmem %s368_s7, 128  ;;  %p483_p1 = scmp.lt.s32.totalorder %s368_s7, %s368_s7 }
  0x10   :  { %v390_v43 = vld [vmem:[%s647_s8] ss:$0 sm:$0xff]  ;;  %p479_p0 = scmp.ne.s32.totalorder %s368_s7, %s478_s6  ;;  %p484_p2 = scmp.lt.s32.totalorder %s478_s6, %s478_s6 }
  0x12   :  { %434 = vmatpush3.bf16.msra.mxu0 %v468_v9  ;;  %p485_p3 = por %p484_p2, %p483_p1 }
  0x13   :  { %435 = vmatprep.subr.bf16.mxu0 %v500_v2 }
  0x14   :  { %p486_p4 = pnand %p485_p3, %p479_p0 }
  0x16   :  { %436 = vmatpush3.bf16.msra.mxu0 %v469_v10 }
  0x17   :  { %437 = vmatprep.subr.bf16.mxu0 %v500_v2 }
  0x1a   :  { %438 = vmatpush3.bf16.msra.mxu0 %v470_v11 }
  0x1b   :  { %439 = vmatprep.subr.bf16.mxu0 %v500_v2 }
  0x1e   :  { %440 = vmatpush3.bf16.msra.mxu0 %v471_v12 }
  0x1f   :  { %441 = vmatprep.subr.bf16.mxu0 %v500_v2 }
  0x22   :  { %442 = vmatpush3.bf16.msra.mxu0 %v472_v21 }
  0x23   :  { %443 = vmatprep.subr.bf16.mxu0 %v500_v2 }
  0x26   :  { %444 = vmatpush3.bf16.msra.mxu0 %v473_v22 }
  0xc6   :  { %v117_v14 = vpop.f32.mrf.mxu1 }
  0xc7   :  { %v118_v15 = vadd.f32 %v375_v13, %v117_v14 }
  0xc8   :  { %v419_v16 = vpop.f32.mrf.mxu1 }
  0xc9   :  { %v123_v17 = vmax.f32 %v118_v15, 0.0 }
  0xca   :  { %v120_v18 = vpop.f32.mrf.mxu1 }
  0xcb   :  { %v124_v19 = vpack.c.bf16 %v123_v17, %v123_v17 }
  0xcc   :  { %v420_v20 = vpop.f32.mrf.mxu1 }
  0xcd   :  { %426 = vmatmul.mubr.msk.bf16.vlgmr.msra.gmra.mxu1 %vm143_vm3, %v124_v19 }
  0xce   :  { %457 = vmatprep.mubr.msk.bf16.mxu1 %vm501_vm1, %v500_v2  ;;  %450 = vmatpush3.bf16.msra.mxu1 %v474_v23 }
  0xcf   :  { %451 = vmatprep.subr.bf16.mxu1 %v500_v2 }
  0xd2   :  { %452 = vmatpush3.bf16.msra.mxu1 %v475_v24 }
  0xd3   :  { %453 = vmatprep.subr.bf16.mxu1 %v500_v2 }
  0xd6   :  { %454 = vmatpush3.bf16.msra.mxu1 %v476_v33 }
  0xd7   :  { %455 = vmatprep.subr.bf16.mxu1 %v500_v2 }
  0xda   :  { %456 = vmatpush3.bf16.msra.mxu1 %v477_v34 }
 0x18d   :  { %v181_v26 = vpop.f32.mrf.mxu1 }
 0x18e   :  { %v182_v27 = vadd.f32 %v377_v25, %v181_v26 }
 0x18f   :  { %v427_v28 = vpop.f32.mrf.mxu1 }
 0x190   :  { %v187_v29 = vmax.f32 %v182_v27, 0.0 }
 0x191   :  { %v184_v30 = vpop.f32.mrf.mxu1 }
 0x192   :  { %v188_v31 = vpack.c.bf16 %v187_v29, %v187_v29 }
 0x193   :  { %v428_v32 = vpop.f32.mrf.mxu1 }
 0x194   :  { %446 = vmatmul.mubr.bf16.vlgmr.msra.gmra.mxu0 %v188_v31 }
 0x254   :  { %v277_v36 = vpop.f32.mrf.mxu0 }
 0x255   :  { %v278_v37 = vadd.f32 %v381_v35, %v277_v36 }
 0x256   :  { %v447_v38 = vpop.f32.mrf.mxu0 }
 0x257   :  { %v283_v39 = vmax.f32 %v278_v37, 0.0 }
 0x258   :  { %v280_v40 = vpop.f32.mrf.mxu0 }
 0x259   :  { %v284_v41 = vpack.c.bf16 %v283_v39, %v283_v39 }
 0x25a   :  { %v448_v42 = vpop.f32.mrf.mxu0 }
 0x25b   :  { %458 = vmatmul.mubr.msk.bf16.vlgmr.msra.gmra.mxu1 %vm315_vm4, %v284_v41 }
 0x31b   :  { %v353_v44 = vpop.f32.mrf.mxu1 }
 0x31c   :  { %v354_v45 = vadd.f32 %v390_v43, %v353_v44 }
 0x31d   :  { %v459_v46 = vpop.f32.mrf.mxu1 }
 0x31e   :  { %360 = vst.msk [vmem:[#allocation2] sm:$0xff] %vm359_vm5, %v354_v45 }
 0x31f   :  { %v356_v47 = vpop.f32.mrf.mxu1 }
 0x320   :  { %489 = shalt.err (!%p486_p4)
}
 0x321   :  { %370 = dma.vmem_to_hbm [thread:$0]  %s368_s7, 128, %s648_s9, [#allocation3]   ;;  %v460_v48 = vpop.f32.mrf.mxu1 }
 0x322   :  { %498 = dma.done.wait [#allocation3], 128  }
 0x323   :  { %499 = vsyncadd [#allocation3], 4294967168 }
 0x324   :  { %374 = vsyncpa [#allocation3], 1 }

</bundles_post_ra>
